<compile_context>
chip_gen: v7x
topology: tpu7x:2x2x1
jax: 0.10.0
libtpu: 0.0.40
codegen_flags: <defaults>
</compile_context>

<pallas_src>
import jax
import jax.numpy as jnp
from jax.experimental import pallas as pl
from jax.experimental.pallas import tpu as pltpu


# ---------------------------------------------------------------------------
# Fused kernel: prompt assembly + all linear projections
# ---------------------------------------------------------------------------
def _fused_prompt_kernel(prefix_ref, suffix_ref, x_all_ref, w_all_ref, b_all_ref,
                         prompts_ref, proj_ref):
    cls_tile, _, ctx_dim = prompts_ref.shape
    n_ctx = x_all_ref.shape[1]

    # ---- prompts tile = cat([prefix, ctx, suffix], dim=1) for this class tile.
    # Assemble the full block in registers, then a single dense full-block store
    # (no per-class unroll, no masked vst at unaligned row offsets 1 / 1+n_ctx).
    ctx = x_all_ref[0]                                           # (n_ctx, ctx_dim)
    prefix = prefix_ref[...][:, None, :]                         # (cls_tile, 1, ctx_dim)
    ctx_b = jnp.broadcast_to(ctx[None], (cls_tile, n_ctx, ctx_dim))
    prompts_ref[...] = jnp.concatenate([prefix, ctx_b, suffix_ref[...]], axis=1)

    # ---- all `depth` Linear(ctx_dim, vis_dim) projections in ONE batched MXU
    # contraction.  Weights arrive pre-transposed (depth, ctx_dim, vis_dim) so
    # this is a plain x @ Wt; bf16 inputs, f32 accumulation.  The per-layer
    # batch dim keeps it correct when the clone weights diverge after training.
    # (Recomputed identically per class-tile grid step -- tiny and idempotent.)
    y = jnp.einsum('bnk,bkv->bnv',
                   x_all_ref[...].astype(jnp.bfloat16), w_all_ref[...],
                   preferred_element_type=jnp.float32)
    proj_ref[...] = (y + b_all_ref[...]).astype(proj_ref.dtype)


def _pick_cls_tile(n_cls, bytes_per_cls, vmem_budget=24 << 20):
    """Largest class tile whose double-buffered working set fits `vmem_budget`.

    At real MaPLe sizes (n_cls~1000, seq_len=77, ctx_dim=512) the prompts output
    alone is ~158 MB, so the class axis must be tiled.  Budget is generation
    specific: v7x has 64 MiB physical VMEM (raise vmem_limit_bytes above the
    32 MiB scoped default), v5e/v6e have 128 MiB.
    """
    max_tile = max(1, vmem_budget // max(2 * bytes_per_cls, 1))
    if n_cls <= max_tile:
        return n_cls
    # When actually tiling, the class axis is the sublane dim of the squeezed
    # prefix block -> keep it a multiple of 8 that divides n_cls.
    t = (max_tile // 8) * 8
    while t >= 8 and n_cls % t:
        t -= 8
    return t if t >= 8 else n_cls


def fused_prompt_forward(prefix2d, suffix, x_all, w_all_t_bf16, b_all,
                         *, cls_tile=None):
    n_cls, ctx_dim = prefix2d.shape
    n_suffix = suffix.shape[1]
    depth, n_ctx, _ = x_all.shape
    vis_dim = w_all_t_bf16.shape[-1]
    seq_len = 1 + n_ctx + n_suffix
    dtype = x_all.dtype

    if cls_tile is None:
        bytes_per_cls = (1 + n_suffix + seq_len) * ctx_dim * jnp.dtype(dtype).itemsize
        cls_tile = _pick_cls_tile(n_cls, bytes_per_cls)
    assert n_cls % cls_tile == 0
    grid = (n_cls // cls_tile,)

    return pl.pallas_call(
        _fused_prompt_kernel,
        out_shape=(
            jax.ShapeDtypeStruct((n_cls, seq_len, ctx_dim), dtype),   # prompts
            jax.ShapeDtypeStruct((depth, n_ctx, vis_dim), dtype),     # all projections
        ),
        grid=grid,
        in_specs=[
            pl.BlockSpec((cls_tile, ctx_dim), lambda i: (i, 0)),            # prefix (squeezed)
            pl.BlockSpec((cls_tile, n_suffix, ctx_dim), lambda i: (i, 0, 0)),  # suffix
            pl.BlockSpec((depth, n_ctx, ctx_dim), lambda i: (0, 0, 0)),     # x_all (resident)
            pl.BlockSpec((depth, ctx_dim, vis_dim), lambda i: (0, 0, 0)),   # W_all^T bf16 (resident)
            pl.BlockSpec((depth, 1, vis_dim), lambda i: (0, 0, 0)),         # biases (resident)
        ],
        out_specs=(
            pl.BlockSpec((cls_tile, seq_len, ctx_dim), lambda i: (i, 0, 0)),
            pl.BlockSpec((depth, n_ctx, vis_dim), lambda i: (0, 0, 0)),
        ),
        # class axis is independent work -> "parallel" (2x on v7x's two TCs);
        # the resident projection output is rewritten identically by each core.
        compiler_params=pltpu.CompilerParams(
            dimension_semantics=("parallel",)),
    )(prefix2d, suffix, x_all, w_all_t_bf16, b_all)


# ---------------------------------------------------------------------------
# MultiModalPromptLearner (synthetic, deterministic parameter init)
# ---------------------------------------------------------------------------
class MultiModalPromptLearner:
    def __init__(self, key, *, n_cls=2, n_ctx=4, ctx_dim=32, vis_dim=64,
                 seq_len=16, prompt_depth=3, dtype=jnp.float32):
        assert prompt_depth >= 1
        self.n_cls = n_cls
        self.n_ctx = n_ctx
        self.compound_prompts_depth = prompt_depth
        n_suffix = seq_len - 1 - n_ctx

        keys = jax.random.split(key, 8)

        # ctx vectors ~ N(0, 0.02)              (nn.init.normal_(std=0.02))
        self.ctx = (0.02 * jax.random.normal(keys[0], (n_ctx, ctx_dim))).astype(dtype)

        # self.proj = nn.Linear(ctx_dim, vis_dim)   (nn.Linear default init)
        bound = 1.0 / (ctx_dim ** 0.5)
        self.proj_w = jax.random.uniform(keys[1], (vis_dim, ctx_dim),
                                         minval=-bound, maxval=bound).astype(dtype)
        self.proj_b = jax.random.uniform(keys[2], (vis_dim,),
                                         minval=-bound, maxval=bound).astype(dtype)

        # compound_prompts_text: (depth-1) params (n_ctx, ctx_dim), N(0, 0.02)
        self.compound_prompts_text = [
            (0.02 * jax.random.normal(jax.random.fold_in(keys[3], i),
                                      (n_ctx, ctx_dim))).astype(dtype)
            for i in range(prompt_depth - 1)
        ]

        # compound_prompt_projections = _get_clones(single_layer, depth-1).
        # deepcopy makes them identical at init; add a small per-clone
        # perturbation to emulate post-training divergence so the per-layer
        # (stacked-weight) projection path is genuinely exercised.
        single_w = jax.random.uniform(keys[4], (vis_dim, ctx_dim),
                                      minval=-bound, maxval=bound).astype(dtype)
        single_b = jax.random.uniform(keys[5], (vis_dim,),
                                      minval=-bound, maxval=bound).astype(dtype)
        self.compound_prompt_projections = []
        for i in range(prompt_depth - 1):
            kw = jax.random.fold_in(keys[4], 100 + i)
            kb = jax.random.fold_in(keys[5], 100 + i)
            w_i = (single_w + 0.01 * jax.random.normal(kw, single_w.shape)).astype(dtype)
            b_i = (single_b + 0.01 * jax.random.normal(kb, single_b.shape)).astype(dtype)
            self.compound_prompt_projections.append((w_i, b_i))

        # buffers: token_prefix (SOS) and token_suffix (class / EOS embeddings)
        self.token_prefix = jax.random.normal(
            keys[6], (n_cls, 1, ctx_dim)).astype(dtype)
        self.token_suffix = jax.random.normal(
            keys[7], (n_cls, n_suffix, ctx_dim)).astype(dtype)

        # --- kernel-side precompute (static params -> do it once) -------------
        # squeeze (n_cls, 1, ctx_dim) -> (n_cls, ctx_dim): avoids 8-sublane-padded
        # operand tiles and masked row DMAs.
        self.token_prefix_sq = self.token_prefix.reshape(n_cls, ctx_dim)
        # pre-transpose + pre-cast every projection weight once:
        # (depth, ctx_dim, vis_dim) bf16 -> kernel does plain x @ Wt, no in-kernel
        # rhs transpose.  (During training, keep params stored transposed or
        # transpose in the wrapper before the call.)
        w_list = [self.proj_w] + [w for (w, _) in self.compound_prompt_projections]
        b_list = [self.proj_b] + [b for (_, b) in self.compound_prompt_projections]
        self.w_all_t_bf16 = jnp.stack([w.T for w in w_list], axis=0).astype(jnp.bfloat16)
        self.b_all = jnp.stack(b_list, axis=0).reshape(prompt_depth, 1, vis_dim).astype(dtype)
        self.stacked_text = (jnp.stack(self.compound_prompts_text, axis=0)
                             if prompt_depth > 1 else None)

    def forward(self):
        # stack ctx with the compound text prompts -> one batched projection input
        if self.stacked_text is not None:
            x_all = jnp.concatenate([self.ctx[None], self.stacked_text], axis=0)
        else:
            x_all = self.ctx[None]

        prompts, proj_all = fused_prompt_forward(
            self.token_prefix_sq, self.token_suffix, x_all,
            self.w_all_t_bf16, self.b_all)

        shared_ctx = proj_all[0]
        depth_m1 = self.compound_prompts_depth - 1
        visual_deep_prompts = [proj_all[1 + i] for i in range(depth_m1)]
        return prompts, shared_ctx, self.compound_prompts_text, visual_deep_prompts


# ---------------------------------------------------------------------------
# Pure-JAX reference for correctness check (same bf16-input / f32-acc numerics)
# ---------------------------------------------------------------------------
def reference_forward(m):
    ctx_e = jnp.broadcast_to(m.ctx[None], (m.n_cls,) + m.ctx.shape)
    prompts = jnp.concatenate([m.token_prefix, ctx_e, m.token_suffix], axis=1)
    shared = jnp.dot(m.ctx.astype(jnp.bfloat16), m.proj_w.astype(jnp.bfloat16).T,
                     preferred_element_type=jnp.float32) + m.proj_b
    deep = [jnp.dot(p.astype(jnp.bfloat16), w.astype(jnp.bfloat16).T,
                    preferred_element_type=jnp.float32) + b
            for p, (w, b) in zip(m.compound_prompts_text,
                                 m.compound_prompt_projections)]
    return prompts, shared, m.compound_prompts_text, deep


if __name__ == "__main__":
    key = jax.random.PRNGKey(0)
    learner = MultiModalPromptLearner(
        key, n_cls=2, n_ctx=4, ctx_dim=32, vis_dim=64, seq_len=16,
        prompt_depth=3, dtype=jnp.float32)

    prompts, shared_ctx, text_prompts, visual_prompts = learner.forward()
    jax.block_until_ready(prompts)
    jax.block_until_ready(shared_ctx)
    for v in visual_prompts:
        jax.block_until_ready(v)

    # correctness check vs. pure-JAX reference
    r_prompts, r_shared, r_text, r_visual = reference_forward(learner)
    assert prompts.shape == (2, 16, 32) and shared_ctx.shape == (4, 64)
    assert jnp.allclose(prompts, r_prompts, atol=1e-6, rtol=1e-6)
    assert jnp.allclose(shared_ctx, r_shared, atol=1e-4, rtol=1e-4)
    assert len(visual_prompts) == 2
    for a, b in zip(visual_prompts, r_visual):
        assert a.shape == (4, 64)
        assert jnp.allclose(a, b, atol=1e-4, rtol=1e-4)

    print("KERNEL_OK")
</pallas_src>

<mosaic_0001>
module attributes {stable_mosaic.version = 11 : i64} {
  func.func @_fused_prompt_kernel(%arg0: i32, %arg1: memref<2x32xf32, #tpu.memory_space<vmem>>, %arg2: memref<2x11x32xf32, #tpu.memory_space<vmem>>, %arg3: memref<3x4x32xf32, #tpu.memory_space<vmem>>, %arg4: memref<3x32x64xbf16, #tpu.memory_space<vmem>>, %arg5: memref<3x1x64xf32, #tpu.memory_space<vmem>>, %arg6: memref<2x16x32xf32, #tpu.memory_space<vmem>>, %arg7: memref<3x4x64xf32, #tpu.memory_space<vmem>>) attributes {dimension_semantics = [#tpu.dimension_semantics<parallel>], iteration_bounds = array<i64: 1>, scalar_prefetch = 0 : i64, scratch_operands = 0 : i64, tpu.core_type = #tpu.core_type<tc>, window_params = [{transform_indices = @transform_0, window_bounds = array<i64: 2, 32>}, {transform_indices = @transform_1, window_bounds = array<i64: 2, 11, 32>}, {pipeline_mode = #tpu.pipeline_mode<synchronous>, transform_indices = @transform_2, window_bounds = array<i64: 3, 4, 32>}, {pipeline_mode = #tpu.pipeline_mode<synchronous>, transform_indices = @transform_3, window_bounds = array<i64: 3, 32, 64>}, {pipeline_mode = #tpu.pipeline_mode<synchronous>, transform_indices = @transform_4, window_bounds = array<i64: 3, 1, 64>}, {transform_indices = @transform_5, window_bounds = array<i64: 2, 16, 32>}, {pipeline_mode = #tpu.pipeline_mode<synchronous>, transform_indices = @transform_6, window_bounds = array<i64: 3, 4, 64>}]} {
    %c0 = arith.constant 0 : index
    %c0_0 = arith.constant 0 : index
    %c0_1 = arith.constant 0 : index
    %0 = vector.load %arg3[%c0, %c0_0, %c0_1] : memref<3x4x32xf32, #tpu.memory_space<vmem>>, vector<1x4x32xf32>
    %1 = vector.shape_cast %0 : vector<1x4x32xf32> to vector<4x32xf32>
    %c0_2 = arith.constant 0 : index
    %c0_3 = arith.constant 0 : index
    %2 = vector.load %arg1[%c0_2, %c0_3] : memref<2x32xf32, #tpu.memory_space<vmem>>, vector<2x32xf32>
    %3 = vector.shape_cast %2 : vector<2x32xf32> to vector<2x1x32xf32>
    %4 = vector.shape_cast %1 : vector<4x32xf32> to vector<1x4x32xf32>
    %5 = vector.shape_cast %4 : vector<1x4x32xf32> to vector<1x4x32xf32>
    %6 = vector.broadcast %5 : vector<1x4x32xf32> to vector<2x4x32xf32>
    %c0_4 = arith.constant 0 : index
    %c0_5 = arith.constant 0 : index
    %c0_6 = arith.constant 0 : index
    %7 = vector.load %arg2[%c0_4, %c0_5, %c0_6] : memref<2x11x32xf32, #tpu.memory_space<vmem>>, vector<2x11x32xf32>
    %8 = tpu.concatenate %3, %6, %7 in 1 : vector<2x1x32xf32>, vector<2x4x32xf32>, vector<2x11x32xf32> -> vector<2x16x32xf32>
    %c0_7 = arith.constant 0 : index
    %c0_8 = arith.constant 0 : index
    %c0_9 = arith.constant 0 : index
    %9 = vector.load %arg6[%c0_7, %c0_8, %c0_9] : memref<2x16x32xf32, #tpu.memory_space<vmem>>, vector<2x16x32xf32>
    tpu.vector_store %arg6[%c0_7, %c0_8, %c0_9], %8 {strides = array<i32>} : memref<2x16x32xf32, #tpu.memory_space<vmem>>, vector<2x16x32xf32>,
    %c0_10 = arith.constant 0 : index
    %c0_11 = arith.constant 0 : index
    %c0_12 = arith.constant 0 : index
    %10 = vector.load %arg3[%c0_10, %c0_11, %c0_12] : memref<3x4x32xf32, #tpu.memory_space<vmem>>, vector<3x4x32xf32>
    %11 = arith.truncf %10 : vector<3x4x32xf32> to vector<3x4x32xbf16>
    %c0_13 = arith.constant 0 : index
    %c0_14 = arith.constant 0 : index
    %c0_15 = arith.constant 0 : index
    %12 = vector.load %arg4[%c0_13, %c0_14, %c0_15] : memref<3x32x64xbf16, #tpu.memory_space<vmem>>, vector<3x32x64xbf16>
    "tpu.trace_start"() <{level = 10 : i32, message = "bnk,bkv->bnv"}> : () -> ()
    %cst = arith.constant dense<0.000000e+00> : vector<3x4x64xf32>
    %13 = tpu.matmul %11, %12, %cst {dimension_numbers = #tpu.dot_dimension_numbers<[2], [1], [1], [2], [0, 0, 0, 1, 1, 2], [0], [0]>} : vector<3x4x32xbf16>, vector<3x32x64xbf16>, vector<3x4x64xf32> -> vector<3x4x64xf32>
    "tpu.trace_stop"() : () -> ()
    %c0_16 = arith.constant 0 : index
    %c0_17 = arith.constant 0 : index
    %c0_18 = arith.constant 0 : index
    %14 = vector.load %arg5[%c0_16, %c0_17, %c0_18] : memref<3x1x64xf32, #tpu.memory_space<vmem>>, vector<3x1x64xf32>
    %15 = vector.broadcast %14 : vector<3x1x64xf32> to vector<3x4x64xf32>
    %16 = arith.addf %13, %15 : vector<3x4x64xf32>
    %c0_19 = arith.constant 0 : index
    %c0_20 = arith.constant 0 : index
    %c0_21 = arith.constant 0 : index
    %17 = vector.load %arg7[%c0_19, %c0_20, %c0_21] : memref<3x4x64xf32, #tpu.memory_space<vmem>>, vector<3x4x64xf32>
    tpu.vector_store %arg7[%c0_19, %c0_20, %c0_21], %16 {strides = array<i32>} : memref<3x4x64xf32, #tpu.memory_space<vmem>>, vector<3x4x64xf32>,
    return
  }
  func.func @transform_0(%arg0: i32) -> (i32, i32) {
    %c0_i32 = arith.constant 0 : i32
    %c0_i32_0 = arith.constant 0 : i32
    return %arg0, %c0_i32 : i32, i32
  }
  func.func @transform_1(%arg0: i32) -> (i32, i32, i32) {
    %c0_i32 = arith.constant 0 : i32
    %c0_i32_0 = arith.constant 0 : i32
    %c0_i32_1 = arith.constant 0 : i32
    return %arg0, %c0_i32, %c0_i32_0 : i32, i32, i32
  }
  func.func @transform_2(%arg0: i32) -> (i32, i32, i32) {
    %c0_i32 = arith.constant 0 : i32
    %c0_i32_0 = arith.constant 0 : i32
    %c0_i32_1 = arith.constant 0 : i32
    %c0_i32_2 = arith.constant 0 : i32
    return %c0_i32, %c0_i32_0, %c0_i32_1 : i32, i32, i32
  }
  func.func @transform_3(%arg0: i32) -> (i32, i32, i32) {
    %c0_i32 = arith.constant 0 : i32
    %c0_i32_0 = arith.constant 0 : i32
    %c0_i32_1 = arith.constant 0 : i32
    %c0_i32_2 = arith.constant 0 : i32
    return %c0_i32, %c0_i32_0, %c0_i32_1 : i32, i32, i32
  }
  func.func @transform_4(%arg0: i32) -> (i32, i32, i32) {
    %c0_i32 = arith.constant 0 : i32
    %c0_i32_0 = arith.constant 0 : i32
    %c0_i32_1 = arith.constant 0 : i32
    %c0_i32_2 = arith.constant 0 : i32
    return %c0_i32, %c0_i32_0, %c0_i32_1 : i32, i32, i32
  }
  func.func @transform_5(%arg0: i32) -> (i32, i32, i32) {
    %c0_i32 = arith.constant 0 : i32
    %c0_i32_0 = arith.constant 0 : i32
    %c0_i32_1 = arith.constant 0 : i32
    return %arg0, %c0_i32, %c0_i32_0 : i32, i32, i32
  }
  func.func @transform_6(%arg0: i32) -> (i32, i32, i32) {
    %c0_i32 = arith.constant 0 : i32
    %c0_i32_0 = arith.constant 0 : i32
    %c0_i32_1 = arith.constant 0 : i32
    %c0_i32_2 = arith.constant 0 : i32
    return %c0_i32, %c0_i32_0, %c0_i32_1 : i32, i32, i32
  }
}

</mosaic_0001>

<bundles_post_ra>
// kernel: tpu_custom_call.1
= control target key start
LH: loop header
LB: loop body
LE: loop exit
PB: predicated region body
PF: predicated region fallthrough
CT: control target
= control target key end

     0   :  { %12 = vsyncpa [#allocation3], 0  ;;  %v433_v1 = vmov 0.0   ;;  %vm434_vm0 = vmmov 0   ;;  %vm79_vm1 = vcmask 261120   ;;  %s568_s0 = inlined_call_operand.vmem [shape: f32[2,32], index: 0, kind: input, shape index: {}]   ;;  %s569_s1 = inlined_call_operand.vmem [shape: f32[2,11,32], index: 1, kind: input, shape index: {}]   ;;  %s570_s2 = inlined_call_operand.vmem [shape: f32[3,4,32], index: 2, kind: input, shape index: {}]   ;;  %s571_s3 = inlined_call_operand.vmem [shape: bf16[3,32,64], index: 3, kind: input, shape index: {}]   ;;  %s572_s4 = inlined_call_operand.vmem [shape: f32[3,1,64], index: 4, kind: input, shape index: {}]   ;;  %s573_s5 = inlined_call_operand.hbm [shape: f32[2,16,32], index: 5, kind: output, shape index: {0}]   ;;  %s574_s6 = inlined_call_operand.hbm [shape: f32[3,4,64], index: 6, kind: output, shape index: {1}]  }
   0x1   :  { %v379_v0 = vld [vmem:[%s571_s3] sm:$0xff]   ;;  %346 = vmatprep.subr.bf16.mxu0 %v433_v1  ;;  %v380_v2 = vld [vmem:[%s571_s3 + $0x8] sm:$0xff]   ;;  %354 = vmatprep.subr.bf16.mxu1 %v433_v1  ;;  %v381_v3 = vld [vmem:[%s571_s3 + $0x10] sm:$0xff]  }
   0x2   :  { %347 = vmatpush3.bf16.msra.mxu0 %v379_v0  ;;  %350 = vmatprep.mubr.msk.bf16.mxu0 %vm434_vm0, %v433_v1  ;;  %v84_v4 = vld [vmem:[%s570_s2] sm:$0xf]  ;;  %v383_v6 = vld [vmem:[%s571_s3 + $0x18] sm:$0xff]   ;;  %v85_v8 = vld [vmem:[%s570_s2 + $0x4] sm:$0xf] }
   0x3   :  { %348 = vmatprep.subr.bf16.mxu0 %v433_v1  ;;  %358 = vmatprep.mubr.msk.bf16.mxu1 %vm434_vm0, %v433_v1  ;;  %v87_v5 = vpack.c.bf16 %v84_v4, %v84_v4  ;;  %v382_v7 = vld [vmem:[%s571_s3 + $0x20] sm:$0xff]   ;;  %v88_v9 = vpack.c.bf16 %v85_v8, %v85_v8 }
   0x4   :  { %355 = vmatpush3.bf16.msra.mxu1 %v381_v3 }
   0x5   :  { %356 = vmatprep.subr.bf16.mxu1 %v433_v1 }
   0x6   :  { %349 = vmatpush3.bf16.msra.mxu0 %v380_v2 }
   0x7   :  { %362 = vmatprep.subr.bf16.mxu0 %v433_v1 }
   0x8   :  { %13 = vsyncpa [#allocation5], 0  ;;  %357 = vmatpush3.bf16.msra.mxu1 %v383_v6  ;;  %v384_v10 = vld [vmem:[%s571_s3 + $0x28] sm:$0xff]   ;;  %v435_v13 = vmov 1966171168   ;;  %v39_v15 = vlaneseq  ;;  %v52_v24 = vld [vmem:[%s569_s1] sm:$0xff] }
   0x9   :  { %351 = vmatmul.mubr.msk.bf16.vlgmr.msra.gmra.mrb[0].mxu0 %vm79_vm1, %v87_v5  ;;  %v86_v11 = vld [vmem:[%s570_s2 + $0x8] sm:$0xf]  ;;  %v37_v14 = vunpack.c.l.s4 %v435_v13  ;;  %v324_v18 = vld.sshfl [vmem:[%s568_s0] sm:$0x11 pattern:$0x75316420] }
   0xa   :  { %363 = vmatpush3.bf16.msra.mxu0 %v382_v7  ;;  %366 = vmatprep.mubr.msk.bf16.mxu0 %vm434_vm0, %v433_v1  ;;  %v89_v12 = vpack.c.bf16 %v86_v11, %v86_v11  ;;  %v40_v17 = vshrl.u32 %v39_v15, 7  ;;  %v35_v19 = vcombine.high %v324_v18, %v324_v18  ;;  %v25_v21 = vld [vmem:[%s570_s2] sm:$0xf]  ;;  %v53_v25 = vld [vmem:[%s569_s1 + $0x8] sm:$0x7]  ;;  %v54_v26 = vld [vmem:[%s569_s1 + $0x10] sm:$0xff] }
   0xb   :  { %364 = vmatprep.subr.bf16.mxu0 %v433_v1  ;;  %359 = vmatmul.mubr.msk.bf16.vlgmr.msra.gmra.mrb[0].mxu1 %vm79_vm1, %v88_v9  ;;  %v38_v16 = vunpack.c.0.s8 %v37_v14  ;;  %v57_v27 = vrot.slane %v25_v21, 7  ;;  %v55_v28 = vld [vmem:[%s569_s1 + $0x18] sm:$0x7]  ;;  %v64_v29 = vrot.slane %v52_v24, 3  ;;  %v65_v30 = vrot.slane %v53_v25, 3  ;;  %s436_s2 = smov [#allocation2]  }
   0xc   :  { %v67_v31 = vrot.slane %v54_v26, 3  ;;  %vm74_vm2 = vcmask 1040384   ;;  %vm63_vm3 = vcmask 1044480   ;;  %v68_v32 = vrot.slane %v55_v28, 3  ;;  %s297_s25 = sshll.u32 %s436_s2, 4  ;;  %s298_s25 = int_to_ptr.vmem [resolvable:$true] %s297_s25 }
   0xd   :  { %v41_v20 = vsub.s32 %v38_v16, %v40_v17  ;;  %v66_v35 = vsel %vm63_vm3, %v64_v29, %v65_v30  ;;  %s385_s1 = scalar_lea.vmem %s298_s25, 512  ;;  %p390_p1 = scmp.lt.s32.totalorder %s298_s25, %s298_s25 }
   0xe   :  { %365 = vmatpush3.bf16.msra.mxu0 %v384_v10  ;;  %v69_v38 = vsel %vm63_vm3, %v67_v31, %v68_v32  ;;  %81 = vst.msk [vmem:[#allocation2 + $0x8] sm:$0xff] %vm79_vm1, %v66_v35  ;;  %p386_p0 = scmp.ne.s32.totalorder %s298_s25, %s385_s1  ;;  %p391_p2 = scmp.lt.s32.totalorder %s385_s1, %s385_s1 }
   0xf   :  { %v42_v22 = vrot.slane %v324_v18, %v41_v20  ;;  %v49_v23 = vrot.slane %v35_v19, %v41_v20  ;;  %83 = vst.msk [vmem:[#allocation2 + $0x18] sm:$0xff] %vm79_vm1, %v69_v38 }
  0x10   :  { %p392_p3 = por %p391_p2, %p390_p1 }
  0x11   :  { %367 = vmatmul.mubr.msk.bf16.vlgmr.msra.gmra.mrb[4].mxu0 %vm79_vm1, %v89_v12  ;;  %v75_v33 = vsel %vm74_vm2, %v42_v22, %v57_v27  ;;  %v76_v34 = vsel %vm74_vm2, %v49_v23, %v57_v27 }
  0x12   :  { %v77_v36 = vsel %vm63_vm3, %v75_v33, %v64_v29  ;;  %v78_v37 = vsel %vm63_vm3, %v76_v34, %v67_v31  ;;  %p393_p4 = pnand %p392_p3, %p386_p0 }
  0x13   :  { %80 = vst.msk [vmem:[#allocation2] sm:$0xff] %vm79_vm1, %v77_v36  ;;  %82 = vst.msk [vmem:[#allocation2 + $0x10] sm:$0xff] %vm79_vm1, %v78_v37 }
  0x14   :  { %396 = shalt.err (!%p393_p4)
}
  0x15   :  { %s397_s28 = scalar_lea.hbm %s573_s5, 512 }
  0x16   :  { %p398_p5 = scmp.ne.s32.totalorder %s573_s5, %s397_s28  ;;  %p401_p6 = scmp.lt.u32.totalorder %s397_s28, %s573_s5 }
  0x18   :  { %p403_p7 = pnand %p401_p6, %p398_p5 }
  0x1a   :  { %406 = shalt.err (!%p403_p7)
}
  0x1b   :  { %s437_s9 = smov 128   ;;  %s438_s10 = smov 8   ;;  %v325_v39 = vld [vmem:[%s572_s4] ss:$0 sm:$0xff]  ;;  %vm288_vm4 = vcmask 519168  }
  0x1c   :  { %303 = dma.vmem_to_hbm [thread:$0]  %s298_s25, 512, %s573_s5, [#allocation3], %s437_s9, %s437_s9, %s438_s10  }
  0x1d   :  { %v326_v41 = vld [vmem:[%s572_s4 + $0x1] ss:$0 sm:$0xff]  ;;  %s439_s5 = smov [#allocation4]   ;;  %v327_v51 = vld [vmem:[%s572_s4 + $0x2] ss:$0 sm:$0xff] }
  0x1e   :  { %s309_s16 = sshll.u32 %s439_s5, 4  ;;  %s310_s16 = int_to_ptr.vmem [resolvable:$true] %s309_s16 }
  0x1f   :  { %s407_s19 = scalar_lea.vmem %s310_s16, 192  ;;  %p412_p9 = scmp.lt.s32.totalorder %s310_s16, %s310_s16 }
  0x20   :  { %p408_p8 = scmp.ne.s32.totalorder %s310_s16, %s407_s19  ;;  %p413_p10 = scmp.lt.s32.totalorder %s407_s19, %s407_s19 }
  0x22   :  { %p414_p11 = por %p413_p10, %p412_p9 }
  0x24   :  { %p415_p12 = pnand %p414_p11, %p408_p8 }
  0xdc   :  { %v172_v40 = vpop.f32.mrb[0].mxu0 }
  0xdd   :  { %v173_v42 = vadd.f32 %v325_v39, %v172_v40  ;;  %v352_v43 = vpop.f32.mrb[1].mxu0 }
  0xde   :  { %v175_v44 = vpop.f32.mrb[2].mxu0  ;;  %v227_v45 = vpop.f32.mrb[0].mxu1 }
  0xdf   :  { %289 = vst.msk [vmem:[#allocation4] sm:$0xf] %vm288_vm4, %v173_v42  ;;  %v353_v46 = vpop.f32.mrb[3].mxu0  ;;  %v228_v47 = vadd.f32 %v326_v41, %v227_v45  ;;  %v360_v48 = vpop.f32.mrb[1].mxu1 }
  0xe0   :  { %v230_v49 = vpop.f32.mrb[2].mxu1 }
  0xe1   :  { %290 = vst.msk [vmem:[#allocation4 + $0x4] sm:$0xf] %vm288_vm4, %v228_v47  ;;  %v361_v50 = vpop.f32.mrb[3].mxu1 }
  0xe4   :  { %v282_v52 = vpop.f32.mrb[4].mxu0 }
  0xe5   :  { %v283_v53 = vadd.f32 %v327_v51, %v282_v52  ;;  %v368_v54 = vpop.f32.mrb[5].mxu0 }
  0xe6   :  { %v285_v55 = vpop.f32.mrb[6].mxu0 }
  0xe7   :  { %291 = vst.msk [vmem:[#allocation4 + $0x8] sm:$0xf] %vm288_vm4, %v283_v53  ;;  %v369_v56 = vpop.f32.mrb[7].mxu0 }
  0xe8   :  { %418 = shalt.err (!%p415_p12)
}
  0xe9   :  { %s419_s22 = scalar_lea.hbm %s574_s6, 192 }
  0xea   :  { %p420_p13 = scmp.ne.s32.totalorder %s574_s6, %s419_s22  ;;  %p423_p0 = scmp.lt.u32.totalorder %s419_s22, %s574_s6 }
  0xec   :  { %p425_p1 = pnand %p423_p0, %p420_p13 }
  0xee   :  { %428 = shalt.err (!%p425_p1)
}
  0xef   :  { %s440_s2 = smov 64   ;;  %s441_s25 = smov 4  }
  0xf0   :  { %315 = dma.vmem_to_hbm [thread:$0]  %s310_s16, 192, %s574_s6, [#allocation5], %s440_s2, %s440_s2, %s441_s25  }
  0xf1   :  { %429 = dma.done.wait [#allocation3], 512  }
  0xf2   :  { %430 = vsyncadd [#allocation3], 4294966784 }
  0xf3   :  { %431 = dma.done.wait [#allocation5], 192  }
  0xf4   :  { %432 = vsyncadd [#allocation5], 4294967104 }
  0xf5   :  { %322 = vsyncpa [#allocation3], 1 }
  0xf6   :  { %323 = vsyncpa [#allocation5], 1 }

</bundles_post_ra>
